<compile_context>
chip_gen: v6e
topology: v6e:2x2x1
jax: 0.10.0
libtpu: 0.0.40
codegen_flags: <defaults>
</compile_context>

<pallas_src>
import functools
import math

import jax
import jax.numpy as jnp
from jax.experimental import pallas as pl
from jax.experimental.pallas import tpu as pltpu
from jax.scipy.special import i0e, i1e


def _round_up(x, m):
    return ((x + m - 1) // m) * m


# ---------------------------------------------------------------------------
# Kernel 1: ImageNet normalization  out = (x - mean) / std, per channel
# ---------------------------------------------------------------------------
def _normalize_kernel(x_ref, mean_ref, std_ref, o_ref):
    o_ref[...] = (x_ref[...] - mean_ref[...]) / std_ref[...]


def imagenet_normalize(x):
    """x: (B, 3, H, W) float32 -> normalized with the torchvision stats."""
    B, C, H, W = x.shape
    hw = H * W
    xf = x.reshape(B, C, hw)
    mean = jnp.array([0.485, 0.456, 0.406], jnp.float32).reshape(1, C, 1)
    std = jnp.array([0.229, 0.224, 0.225], jnp.float32).reshape(1, C, 1)
    out = pl.pallas_call(
        _normalize_kernel,
        out_shape=jax.ShapeDtypeStruct((B, C, hw), jnp.float32),
        grid=(B,),
        in_specs=[
            pl.BlockSpec((1, C, hw), lambda b: (b, 0, 0)),
            pl.BlockSpec((1, C, 1), lambda b: (0, 0, 0)),
            pl.BlockSpec((1, C, 1), lambda b: (0, 0, 0)),
        ],
        out_specs=pl.BlockSpec((1, C, hw), lambda b: (b, 0, 0)),
        compiler_params=pltpu.CompilerParams(
            dimension_semantics=("parallel",)),
    )(xf, mean, std)
    return out.reshape(B, C, H, W)


# ---------------------------------------------------------------------------
# Kernel 2: pose heads  (linear heads -> normalize/softplus -> pose matrix)
# ---------------------------------------------------------------------------
def _scatter_columns(shape, cols):
    """Place each (rows, 1) value into its column of a zero (rows, ncols) array
    using iota + select (avoids unaligned lane concatenation)."""
    idx = jax.lax.broadcasted_iota(jnp.int32, shape, dimension=1)
    out = jnp.zeros(shape, jnp.float32)
    for j, v in cols:
        out = jnp.where(idx == j, v, out)
    return out


def _pose_heads_kernel(h_ref, w_ref, b_ref, pose_ref, extras_ref, *, radius):
    # One MXU matmul for all four heads. w_ref is bf16 (pre-cast, resident in
    # VMEM across the batch grid); activations are cast to bf16 at the MXU
    # input only, accumulation and all VPU math stay float32.
    raw = jnp.dot(h_ref[...].astype(jnp.bfloat16), w_ref[...],
                  preferred_element_type=jnp.float32) + b_ref[...]

    # packed head columns: [tm0, tm1, tv, pm0, pm1, pv, 0...]
    tm0 = raw[:, 0:1]
    tm1 = raw[:, 1:2]
    tv = raw[:, 2:3]
    pm0 = raw[:, 3:4]
    pm1 = raw[:, 4:5]
    pv = raw[:, 5:6]

    eps = 1e-12  # F.normalize eps
    inv_t = 1.0 / jnp.maximum(jnp.sqrt(tm0 * tm0 + tm1 * tm1), eps)
    s_t = tm0 * inv_t
    c_t = tm1 * inv_t
    inv_p = 1.0 / jnp.maximum(jnp.sqrt(pm0 * pm0 + pm1 * pm1), eps)
    s_p = pm0 * inv_p
    c_p = pm1 * inv_p

    def softplus(v):
        return jnp.maximum(v, 0.0) + jnp.log(1.0 + jnp.exp(-jnp.abs(v)))

    theta_var = softplus(tv) + 1.0
    phi_var = softplus(pv + 1.0)   # sic: original code puts the +1 inside softplus

    st_sp = s_t * s_p
    st_cp = s_t * c_p
    ct_sp = c_t * s_p
    ct_cp = c_t * c_p
    ones = jnp.ones_like(s_t)
    r = radius

    # pose = t2 @ rot_theta @ rot_phi @ t1, expanded in closed form (row-major):
    #   [-c_t,  s_t*s_p,  s_t*c_p,  s_t*c_p*r]
    #   [ s_t,  c_t*s_p,  c_t*c_p,  c_t*c_p*r]
    #   [   0,      c_p,     -s_p,     -s_p*r]
    #   [   0,        0,        0,          1]
    pose_ref[...] = _scatter_columns(pose_ref.shape, [
        (0, -c_t), (1, st_sp), (2, st_cp), (3, st_cp * r),
        (4, s_t), (5, ct_sp), (6, ct_cp), (7, ct_cp * r),
        (9, c_p), (10, -s_p), (11, -s_p * r),
        (15, ones),
    ])
    extras_ref[...] = _scatter_columns(extras_ref.shape, [
        (0, s_t), (1, c_t), (2, s_p), (3, c_p), (4, theta_var), (5, phi_var),
    ])


def init_pose_head_params(key, feat_dim=1000):
    """Matches the module init: kaiming_normal_ (fan_in, gain sqrt(2)) weights,
    zero biases. Weights stored as (in_features, out_features)."""
    ks = jax.random.split(key, 4)
    std = math.sqrt(2.0 / feat_dim)

    def lin(k, out_dim):
        return jax.random.normal(k, (feat_dim, out_dim), jnp.float32) * std

    return {
        "w_theta_mean": lin(ks[0], 2), "b_theta_mean": jnp.zeros((1, 2), jnp.float32),
        "w_theta_var": lin(ks[1], 1), "b_theta_var": jnp.zeros((1, 1), jnp.float32),
        "w_phi_mean": lin(ks[2], 2), "b_phi_mean": jnp.zeros((1, 2), jnp.float32),
        "w_phi_var": lin(ks[3], 1), "b_phi_var": jnp.zeros((1, 1), jnp.float32),
    }


def pack_head_params(params, lanes=128):
    """Pack the four heads into one lane-dense (feat_dim, 128) bf16 weight and a
    (1, 128) f32 bias. Column order: [tm0, tm1, tv, pm0, pm1, pv]."""
    w = jnp.concatenate([params["w_theta_mean"], params["w_theta_var"],
                         params["w_phi_mean"], params["w_phi_var"]], axis=1)
    b = jnp.concatenate([params["b_theta_mean"], params["b_theta_var"],
                         params["b_phi_mean"], params["b_phi_var"]], axis=1)
    w = jnp.pad(w, ((0, 0), (0, lanes - w.shape[1]))).astype(jnp.bfloat16)
    b = jnp.pad(b, ((0, 0), (0, lanes - b.shape[1]))).astype(jnp.float32)
    return w, b


def _vmf_entropy_dim2(kappa):
    """Entropy of a von Mises-Fisher on S^1 (m=2), matching the hyperspherical
    VAE implementation: H = log(2*pi*I0(k)) - k * I1(k) / I0(k)."""
    return (jnp.log(2.0 * jnp.pi) + kappa + jnp.log(i0e(kappa))
            - kappa * i1e(kappa) / i0e(kappa))


def pose_inference_heads(h, params, *, radius=1.3, block_m=128):
    """h: (B, 1000) backbone features -> (pose (B,4,4), KL_pose, h).

    Implements the use_sample=False, return_angle=False path of
    pose_inference.forward on top of precomputed features.
    """
    # TODO(synk): VonMisesFisher.rsample (rejection sampling + Householder) has no
    # clean Pallas equivalent; samples fall back to the mean directions.
    B, K = h.shape
    w_packed, b_packed = pack_head_params(params)
    lanes = w_packed.shape[1]

    tm = min(block_m, _round_up(max(B, 1), 8))
    bp = _round_up(B, tm)
    h_pad = jnp.pad(h, ((0, bp - B), (0, 0))) if bp != B else h
    grid = (pl.cdiv(bp, tm),)

    cost = pl.CostEstimate(
        flops=2 * bp * K * lanes + 64 * bp,
        transcendentals=8 * bp,
        bytes_accessed=4 * (bp * K + bp * 16 + bp * 8 + lanes) + 2 * K * lanes,
    )

    pose16, extras = pl.pallas_call(
        functools.partial(_pose_heads_kernel, radius=float(radius)),
        out_shape=(jax.ShapeDtypeStruct((bp, 16), jnp.float32),
                   jax.ShapeDtypeStruct((bp, 8), jnp.float32)),
        grid=grid,
        in_specs=[
            pl.BlockSpec((tm, K), lambda i: (i, 0)),      # batch tile of features
            pl.BlockSpec((K, lanes), lambda i: (0, 0)),   # resident packed weights
            pl.BlockSpec((1, lanes), lambda i: (0, 0)),   # resident packed bias
        ],
        out_specs=(pl.BlockSpec((tm, 16), lambda i: (i, 0)),
                   pl.BlockSpec((tm, 8), lambda i: (i, 0))),
        compiler_params=pltpu.CompilerParams(
            dimension_semantics=("parallel",),
            vmem_limit_bytes=32 * 1024 * 1024),
        cost_estimate=cost,
    )(h_pad, w_packed, b_packed)

    pose = pose16[:B].reshape(B, 4, 4)
    theta_var = extras[:B, 4]
    phi_var = extras[:B, 5]

    # KL_pose = -(mean H(q_theta) + mean H(q_phi)): Bessel-function entropy and a
    # scalar mean are O(B) scalar work -> plain JAX glue, not a kernel.
    kl_pose = -(_vmf_entropy_dim2(theta_var).mean()
                + _vmf_entropy_dim2(phi_var).mean())
    return pose, kl_pose, h


# ---------------------------------------------------------------------------
# Pure-JAX reference (mirrors the PyTorch forward; same bf16 matmul precision
# as the kernel so the comparison tolerance stays tight).
# ---------------------------------------------------------------------------
def _reference_forward(x, h, params, radius):
    mean = jnp.array([0.485, 0.456, 0.406], jnp.float32).reshape(1, 3, 1, 1)
    std = jnp.array([0.229, 0.224, 0.225], jnp.float32).reshape(1, 3, 1, 1)
    x_norm = (x - mean) / std

    hb = h.astype(jnp.bfloat16)

    def head(w, b):
        return jnp.dot(hb, w.astype(jnp.bfloat16),
                       preferred_element_type=jnp.float32) + b

    tmean = head(params["w_theta_mean"], params["b_theta_mean"])
    tvar = head(params["w_theta_var"], params["b_theta_var"])
    pmean = head(params["w_phi_mean"], params["b_phi_mean"])
    pvar = head(params["w_phi_var"], params["b_phi_var"])

    def l2norm(v):
        n = jnp.sqrt(jnp.sum(v * v, axis=1, keepdims=True))
        return v / jnp.maximum(n, 1e-12)

    def softplus(v):
        return jnp.maximum(v, 0.0) + jnp.log(1.0 + jnp.exp(-jnp.abs(v)))

    tmean = l2norm(tmean)
    pmean = l2norm(pmean)
    theta_var = softplus(tvar) + 1.0
    phi_var = softplus(pvar + 1.0)

    s_t, c_t = tmean[:, 0], tmean[:, 1]
    s_p, c_p = pmean[:, 0], pmean[:, 1]
    zeros = jnp.zeros_like(s_p)
    ones = jnp.ones_like(s_p)
    B = h.shape[0]
    rot_phi = jnp.stack([ones, zeros, zeros, zeros,
                         zeros, c_p, -s_p, zeros,
                         zeros, s_p, c_p, zeros,
                         zeros, zeros, zeros, ones], axis=1).reshape(B, 4, 4)
    rot_theta = jnp.stack([c_t, zeros, -s_t, zeros,
                           zeros, ones, zeros, zeros,
                           s_t, zeros, c_t, zeros,
                           zeros, zeros, zeros, ones], axis=1).reshape(B, 4, 4)
    t1 = jnp.array([[1, 0, 0, 0], [0, 1, 0, 0],
                    [0, 0, 1, radius], [0, 0, 0, 1]], jnp.float32)
    t2 = jnp.array([[-1, 0, 0, 0], [0, 0, 1, 0],
                    [0, 1, 0, 0], [0, 0, 0, 1]], jnp.float32)
    pose = t2[None] @ (rot_theta @ (rot_phi @ t1[None]))
    kl = -(_vmf_entropy_dim2(theta_var[:, 0]).mean()
           + _vmf_entropy_dim2(phi_var[:, 0]).mean())
    return x_norm, pose, kl, h


if __name__ == "__main__":
    key = jax.random.PRNGKey(0)
    k_x, k_h, k_w = jax.random.split(key, 3)

    B, C, H, W = 2, 3, 16, 16
    feat_dim = 1000            # ResNet-34 classifier output width
    radius = 1.3

    x = jax.random.uniform(k_x, (B, C, H, W), dtype=jnp.float32)
    params = init_pose_head_params(k_w, feat_dim)

    # Stage 1 (Pallas): ImageNet normalization of the input image.
    x_norm = jax.block_until_ready(imagenet_normalize(x))

    # TODO(synk): the ResNet-34 feature_extractor backbone is not translated to
    # Pallas; `h` stands in for feature_extractor(x_norm) -> (B, 1000).
    h = jax.random.normal(k_h, (B, feat_dim), dtype=jnp.float32)

    # Stage 2 (Pallas): linear heads + pose composition; KL via Bessel glue.
    pose, kl_pose, h_out = pose_inference_heads(h, params, radius=radius)
    pose = jax.block_until_ready(pose)
    kl_pose = jax.block_until_ready(kl_pose)

    ref_xnorm, ref_pose, ref_kl, _ = _reference_forward(x, h, params, radius)

    assert x_norm.shape == (B, C, H, W)
    assert pose.shape == (B, 4, 4)
    assert jnp.allclose(x_norm, ref_xnorm, atol=1e-5, rtol=1e-5)
    assert jnp.allclose(pose, ref_pose, atol=2e-3, rtol=2e-3)
    assert jnp.allclose(kl_pose, ref_kl, atol=1e-3, rtol=1e-3)
    assert jnp.allclose(h_out, h)
    assert bool(jnp.isfinite(kl_pose))

    print("KERNEL_OK")
</pallas_src>

<mosaic_0001>
module attributes {stable_mosaic.version = 11 : i64} {
  func.func @_normalize_kernel(%arg0: i32, %arg1: memref<1x3x256xf32, #tpu.memory_space<vmem>>, %arg2: memref<1x3x1xf32, #tpu.memory_space<vmem>>, %arg3: memref<1x3x1xf32, #tpu.memory_space<vmem>>, %arg4: memref<1x3x256xf32, #tpu.memory_space<vmem>>) attributes {dimension_semantics = [#tpu.dimension_semantics<parallel>], iteration_bounds = array<i64: 2>, scalar_prefetch = 0 : i64, scratch_operands = 0 : i64, tpu.core_type = #tpu.core_type<tc>, window_params = [{transform_indices = @transform_0, window_bounds = array<i64: 1, 3, 256>}, {pipeline_mode = #tpu.pipeline_mode<synchronous>, transform_indices = @transform_1, window_bounds = array<i64: 1, 3, 1>}, {pipeline_mode = #tpu.pipeline_mode<synchronous>, transform_indices = @transform_2, window_bounds = array<i64: 1, 3, 1>}, {transform_indices = @transform_3, window_bounds = array<i64: 1, 3, 256>}]} {
    %c0 = arith.constant 0 : index
    %c0_0 = arith.constant 0 : index
    %c0_1 = arith.constant 0 : index
    %0 = vector.load %arg1[%c0, %c0_0, %c0_1] : memref<1x3x256xf32, #tpu.memory_space<vmem>>, vector<1x3x256xf32>
    %c0_2 = arith.constant 0 : index
    %c0_3 = arith.constant 0 : index
    %c0_4 = arith.constant 0 : index
    %1 = vector.load %arg2[%c0_2, %c0_3, %c0_4] : memref<1x3x1xf32, #tpu.memory_space<vmem>>, vector<1x3x1xf32>
    %2 = vector.broadcast %1 : vector<1x3x1xf32> to vector<1x3x256xf32>
    %3 = arith.subf %0, %2 : vector<1x3x256xf32>
    %c0_5 = arith.constant 0 : index
    %c0_6 = arith.constant 0 : index
    %c0_7 = arith.constant 0 : index
    %4 = vector.load %arg3[%c0_5, %c0_6, %c0_7] : memref<1x3x1xf32, #tpu.memory_space<vmem>>, vector<1x3x1xf32>
    %5 = vector.broadcast %4 : vector<1x3x1xf32> to vector<1x3x256xf32>
    %6 = arith.divf %3, %5 : vector<1x3x256xf32>
    %c0_8 = arith.constant 0 : index
    %c0_9 = arith.constant 0 : index
    %c0_10 = arith.constant 0 : index
    %7 = vector.load %arg4[%c0_8, %c0_9, %c0_10] : memref<1x3x256xf32, #tpu.memory_space<vmem>>, vector<1x3x256xf32>
    tpu.vector_store %arg4[%c0_8, %c0_9, %c0_10], %6 {strides = array<i32>} : memref<1x3x256xf32, #tpu.memory_space<vmem>>, vector<1x3x256xf32>,
    return
  }
  func.func @transform_0(%arg0: i32) -> (i32, i32, i32) {
    %c0_i32 = arith.constant 0 : i32
    %c0_i32_0 = arith.constant 0 : i32
    %c0_i32_1 = arith.constant 0 : i32
    return %arg0, %c0_i32, %c0_i32_0 : i32, i32, i32
  }
  func.func @transform_1(%arg0: i32) -> (i32, i32, i32) {
    %c0_i32 = arith.constant 0 : i32
    %c0_i32_0 = arith.constant 0 : i32
    %c0_i32_1 = arith.constant 0 : i32
    %c0_i32_2 = arith.constant 0 : i32
    return %c0_i32, %c0_i32_0, %c0_i32_1 : i32, i32, i32
  }
  func.func @transform_2(%arg0: i32) -> (i32, i32, i32) {
    %c0_i32 = arith.constant 0 : i32
    %c0_i32_0 = arith.constant 0 : i32
    %c0_i32_1 = arith.constant 0 : i32
    %c0_i32_2 = arith.constant 0 : i32
    return %c0_i32, %c0_i32_0, %c0_i32_1 : i32, i32, i32
  }
  func.func @transform_3(%arg0: i32) -> (i32, i32, i32) {
    %c0_i32 = arith.constant 0 : i32
    %c0_i32_0 = arith.constant 0 : i32
    %c0_i32_1 = arith.constant 0 : i32
    return %arg0, %c0_i32, %c0_i32_0 : i32, i32, i32
  }
}

</mosaic_0001>

<bundles_post_ra>
// kernel: tpu_custom_call.1
= control target key start
LH: loop header
LB: loop body
LE: loop exit
PB: predicated region body
PF: predicated region fallthrough
CT: control target
= control target key end

     0   :  { %s313_s12 = smov 0   ;;  %s336_s0 = inlined_call_operand.vmem [shape: f32[2,3,256], index: 0, kind: input, shape index: {}]   ;;  %s337_s1 = inlined_call_operand.vmem [shape: f32[1,3,1], index: 1, kind: input, shape index: {}]   ;;  %s338_s2 = inlined_call_operand.vmem [shape: f32[1,3,1], index: 2, kind: input, shape index: {}]   ;;  %s339_s3 = inlined_call_operand.vmem [shape: f32[2,3,256], index: 3, kind: output, shape index: {}]  }
   0x1 LB: > { %s257_s13 = sadd.s32 4294967295, %s289_s12   ;;  %p261_p0 = scmp.ge.s32.totalorder %s289_s12, 1  ;;  %s289_s12 = sphi %s313_s12, %s13_s12  }
   0x2   : > { %p137_p1 = scmp.lt.s32.totalorder %s289_s12, 3 }
   0x4   : > { %p138_p2 = pnand %p261_p0, %p137_p1 }
   0x5   : > { %p161_p3 = scmp.lt.s32.totalorder (!%p138_p2), %s257_s13, 1 }
   0x6   : > { %141 = sbr.rel (%p138_p2) target bundleno = 156 (0x9c), region = 32 }
   0xb   : > { %v186_v0 = vld [vmem:[%s338_s2] sm:$0x7]  ;;  %v291_v1 = vmov 0   ;;  %v292_v3 = vmov 839922192   ;;  %v180_v5 = vlaneseq  ;;  %s341_s13 = smov (!%p161_p3, %s257_s13), 1 }
   0xc   : > { %280 = vset.pattern.permute.xlu0 %v291_v1  ;;  %v172_v2 = vld [vmem:[%s337_s1] sm:$0x7]  ;;  %v178_v4 = vunpack.c.l.s4 %v292_v3  ;;  %s268_s18 = sshll.u32 %s341_s13, 3 }
   0xd   : > { %189 = vperm.xlu0 %280, %v186_v0   ;;  %v181_v7 = vshrl.u32 %v180_v5, 7  ;;  %s165_s21 = scalar_lea.vmem %s336_s0, %s268_s18  ;;  %s170_s24 = scalar_lea.vmem %s339_s3, %s268_s18 }
   0xe   : > { %v179_v6 = vunpack.c.0.s8 %v178_v4  ;;  %v171_v13 = vld [vmem:[%s165_s21] sm:$0x77] }
  0x10   : > { %v182_v8 = vsub.s32 %v179_v6, %v181_v7 }
  0x11   : > { %175 = vperm.xlu0 %280, %v172_v2  }
  0x88   : > { %v190_v9 = vpop.permute.xlu0 %189 }
  0x89   : > { %v197_v10 = vrot.slane %v190_v9, %v182_v8 }
  0x8b   : > { %281 = vrcp.f32 %v197_v10 }
  0x8c   : > { %v176_v11 = vpop.permute.xlu0 %175 }
  0x8d   : > { %v183_v12 = vrot.slane %v176_v11, %v182_v8 }
  0x8f   : > { %v185_v14 = vsub.f32 %v171_v13, %v183_v12 }
  0x98   : > { %v282_v15 = vpop.eup %281 }
  0x99   : > { %v200_v16 = vmul.f32 %v282_v15, %v185_v14 }
  0x9b   : > { %201 = vst [vmem:[%s170_s24] sm:$0x77] %v200_v16 }
  0x9c PF: > { %s13_s12 = sadd.s32 1, %s289_s12  }
  0x9d   : > { %p10_p4 = scmp.ge.s32.totalorder %s13_s12, 4  }
  0x9f   :  { %12 = sbr.rel (!%p10_p4) target bundleno = 1 (0x1), region = 62 }

</bundles_post_ra>
